<compile_context>
chip_gen: v5e
topology: v5e:2x2
jax: 0.10.0
libtpu: 0.0.40
codegen_flags: <defaults>
</compile_context>

<pallas_src>
import jax
import jax.numpy as jnp
from jax.experimental import pallas as pl
from jax.experimental.pallas import tpu as pltpu

IN_NUM = 285
H1_NUM = 256
H2_NUM = 256
OUT_NUM = 2
OUT_PAD = 128          # lane-dense output block; real logits live in cols [0:2]
NEG_BIG = -1e30        # pad-column bias -> exp underflows to exactly 0


def _round_up(x, m):
    return (x + m - 1) // m * m


def mlp3_kernel(x_ref, w1_ref, b1_ref, w2_ref, b2_ref, w3_ref, b3_ref, o_ref):
    # Raw f32 activations; cast to bf16 in-kernel (MXU-native, half the vreg traffic).
    x = x_ref[...].astype(jnp.bfloat16)                      # (TB, 285)

    # fc1 + bias + relu (f32 accumulation on the MXU, bf16 activation out)
    h1 = jnp.dot(x, w1_ref[...], preferred_element_type=jnp.float32) + b1_ref[...]
    h1 = jnp.maximum(h1, 0.0).astype(jnp.bfloat16)

    # dropout (eval mode) -> identity

    # fc2 + bias + relu
    h2 = jnp.dot(h1, w2_ref[...], preferred_element_type=jnp.float32) + b2_ref[...]
    h2 = jnp.maximum(h2, 0.0).astype(jnp.bfloat16)

    # dropout (eval mode) -> identity

    # fc3 (padded to 128 output lanes) + numerically-stable softmax over dim=1.
    # Pad columns have weight 0 and bias -1e30 -> exp() == 0, so they do not
    # contribute to the denominator; rows of the first 2 columns sum to 1.
    logits = jnp.dot(h2, w3_ref[...], preferred_element_type=jnp.float32) + b3_ref[...]
    m = jnp.max(logits, axis=-1, keepdims=True)
    e = jnp.exp(logits - m)
    o_ref[...] = e / jnp.sum(e, axis=-1, keepdims=True)


def _prepare_params(params):
    """Cast weights to bf16; pad fc3 to OUT_PAD lanes (weights 0, bias -1e30)."""
    w1, b1, w2, b2, w3, b3 = params
    w3p = jnp.pad(w3, ((0, 0), (0, OUT_PAD - OUT_NUM)))
    b3p = jnp.pad(b3, ((0, 0), (0, OUT_PAD - OUT_NUM)), constant_values=NEG_BIG)
    return (w1.astype(jnp.bfloat16), b1.astype(jnp.float32),
            w2.astype(jnp.bfloat16), b2.astype(jnp.float32),
            w3p.astype(jnp.bfloat16), b3p.astype(jnp.float32))


def _choose_tile(B, tb):
    # Multiple of 16 (bf16 sublane packing), capped at tb, and forced to give
    # >=2 grid tiles when the batch is large enough (v7x has 2 TensorCores).
    tile = min(tb, _round_up(B, 16))
    half = _round_up((B + 1) // 2, 16)
    tile = min(tile, max(half, 16))
    return max(tile, 16)


def mlp3_forward(x, params, tb=2048):
    x = x.astype(jnp.float32)            # mirrors din.to(torch.float32); no-op if already f32
    B = x.shape[0]

    TB = _choose_tile(B, tb)
    B_pad = _round_up(B, TB)
    n_tiles = B_pad // TB
    if B_pad != B:                       # only the ragged tail is ever padded/copied
        x = jnp.pad(x, ((0, B_pad - B), (0, 0)))

    w1, b1, w2, b2, w3, b3 = _prepare_params(params)

    flops = 2 * B_pad * (IN_NUM * H1_NUM + H1_NUM * H2_NUM + H2_NUM * OUT_PAD)
    bytes_accessed = (
        B_pad * IN_NUM * 4                              # f32 input
        + (w1.size + w2.size + w3.size) * 2             # bf16 weights
        + (b1.size + b2.size + b3.size) * 4             # f32 biases
        + B_pad * OUT_PAD * 4                           # f32 output (lane-dense)
    )

    const2 = lambda i: (0, 0)            # weights/biases resident across batch tiles

    out = pl.pallas_call(
        mlp3_kernel,
        out_shape=jax.ShapeDtypeStruct((B_pad, OUT_PAD), jnp.float32),
        grid=(n_tiles,),
        in_specs=[
            pl.BlockSpec((TB, IN_NUM), lambda i: (i, 0)),      # full 285-dim block (legal: == array dim)
            pl.BlockSpec((IN_NUM, H1_NUM), const2),
            pl.BlockSpec((1, H1_NUM), const2),
            pl.BlockSpec((H1_NUM, H2_NUM), const2),
            pl.BlockSpec((1, H2_NUM), const2),
            pl.BlockSpec((H2_NUM, OUT_PAD), const2),
            pl.BlockSpec((1, OUT_PAD), const2),
        ],
        out_specs=pl.BlockSpec((TB, OUT_PAD), lambda i: (i, 0)),
        compiler_params=pltpu.CompilerParams(
            dimension_semantics=("parallel",),
            vmem_limit_bytes=32 << 20,
        ),
        cost_estimate=pl.CostEstimate(
            flops=flops,
            transcendentals=B_pad * OUT_PAD,
            bytes_accessed=bytes_accessed,
        ),
    )(x, w1, b1, w2, b2, w3, b3)

    return out[:B, :OUT_NUM]


def init_params(key):
    """Deterministic init mimicking torch.nn.Linear default (U(-1/sqrt(fan_in), +))."""
    def linear(k, fan_in, fan_out):
        kw, kb = jax.random.split(k)
        bound = 1.0 / jnp.sqrt(jnp.float32(fan_in))
        # stored as (in, out) == transpose of torch's (out, in) weight
        w = jax.random.uniform(kw, (fan_in, fan_out), jnp.float32, -bound, bound)
        b = jax.random.uniform(kb, (1, fan_out), jnp.float32, -bound, bound)
        return w, b

    k1, k2, k3 = jax.random.split(key, 3)
    w1, b1 = linear(k1, IN_NUM, H1_NUM)
    w2, b2 = linear(k2, H1_NUM, H2_NUM)
    w3, b3 = linear(k3, H2_NUM, OUT_NUM)
    return (w1, b1, w2, b2, w3, b3)


def mlp3_reference_bf16(x, params):
    """Pure-JAX reference matching the kernel's numerics (bf16 weights/acts, f32 accum)."""
    w1, b1, w2, b2, w3, b3 = params
    xb = x.astype(jnp.float32).astype(jnp.bfloat16)
    h1 = jnp.maximum(jnp.dot(xb, w1.astype(jnp.bfloat16),
                             preferred_element_type=jnp.float32) + b1, 0.0).astype(jnp.bfloat16)
    h2 = jnp.maximum(jnp.dot(h1, w2.astype(jnp.bfloat16),
                             preferred_element_type=jnp.float32) + b2, 0.0).astype(jnp.bfloat16)
    logits = jnp.dot(h2, w3.astype(jnp.bfloat16), preferred_element_type=jnp.float32) + b3
    return jax.nn.softmax(logits, axis=1)


def mlp3_reference_f32(x, params):
    """Full-precision reference matching the original PyTorch module (eval mode)."""
    w1, b1, w2, b2, w3, b3 = params
    x = x.astype(jnp.float32)
    h1 = jnp.maximum(jnp.dot(x, w1) + b1, 0.0)
    h2 = jnp.maximum(jnp.dot(h1, w2) + b2, 0.0)
    return jax.nn.softmax(jnp.dot(h2, w3) + b3, axis=1)


if __name__ == "__main__":
    key = jax.random.PRNGKey(0)
    kp, kx = jax.random.split(key)
    params = init_params(kp)

    # Small batch (single tile).
    x = jax.random.normal(kx, (8, IN_NUM), jnp.float32)
    out = jax.block_until_ready(mlp3_forward(x, params))
    assert out.shape == (8, OUT_NUM)
    assert jnp.allclose(out, mlp3_reference_bf16(x, params), atol=5e-3, rtol=5e-3), \
        "mismatch vs bf16 reference (B=8)"
    assert jnp.allclose(out, mlp3_reference_f32(x, params), atol=2e-2, rtol=2e-2), \
        "mismatch vs f32 reference (B=8)"
    assert jnp.allclose(jnp.sum(out, axis=1), 1.0, atol=1e-5), "softmax rows must sum to 1"

    # Multi-tile batch with a ragged tail (exercises grid pipelining + tail padding
    # + the >=2-tile megacore split).
    x2 = jax.random.normal(jax.random.fold_in(kx, 1), (300, IN_NUM), jnp.float32)
    out2 = jax.block_until_ready(mlp3_forward(x2, params))
    assert out2.shape == (300, OUT_NUM)
    assert jnp.allclose(out2, mlp3_reference_bf16(x2, params), atol=5e-3, rtol=5e-3), \
        "mismatch vs bf16 reference (B=300)"
    assert jnp.allclose(out2, mlp3_reference_f32(x2, params), atol=2e-2, rtol=2e-2), \
        "mismatch vs f32 reference (B=300)"
    assert jnp.allclose(jnp.sum(out2, axis=1), 1.0, atol=1e-5), "softmax rows must sum to 1"

    print("KERNEL_OK")
</pallas_src>

<mosaic_0001>
module attributes {stable_mosaic.version = 11 : i64} {
  func.func @mlp3_kernel(%arg0: i32, %arg1: memref<16x285xf32, #tpu.memory_space<vmem>>, %arg2: memref<285x256xbf16, #tpu.memory_space<vmem>>, %arg3: memref<1x256xf32, #tpu.memory_space<vmem>>, %arg4: memref<256x256xbf16, #tpu.memory_space<vmem>>, %arg5: memref<1x256xf32, #tpu.memory_space<vmem>>, %arg6: memref<256x128xbf16, #tpu.memory_space<vmem>>, %arg7: memref<1x128xf32, #tpu.memory_space<vmem>>, %arg8: memref<16x128xf32, #tpu.memory_space<vmem>>) attributes {dimension_semantics = [#tpu.dimension_semantics<parallel>], iteration_bounds = array<i64: 1>, scalar_prefetch = 0 : i64, scratch_operands = 0 : i64, tpu.core_type = #tpu.core_type<tc>, window_params = [{transform_indices = @transform_0, window_bounds = array<i64: 16, 285>}, {pipeline_mode = #tpu.pipeline_mode<synchronous>, transform_indices = @transform_1, window_bounds = array<i64: 285, 256>}, {pipeline_mode = #tpu.pipeline_mode<synchronous>, transform_indices = @transform_2, window_bounds = array<i64: 1, 256>}, {pipeline_mode = #tpu.pipeline_mode<synchronous>, transform_indices = @transform_3, window_bounds = array<i64: 256, 256>}, {pipeline_mode = #tpu.pipeline_mode<synchronous>, transform_indices = @transform_4, window_bounds = array<i64: 1, 256>}, {pipeline_mode = #tpu.pipeline_mode<synchronous>, transform_indices = @transform_5, window_bounds = array<i64: 256, 128>}, {pipeline_mode = #tpu.pipeline_mode<synchronous>, transform_indices = @transform_6, window_bounds = array<i64: 1, 128>}, {transform_indices = @transform_7, window_bounds = array<i64: 16, 128>}]} {
    %c0 = arith.constant 0 : index
    %c0_0 = arith.constant 0 : index
    %0 = vector.load %arg1[%c0, %c0_0] : memref<16x285xf32, #tpu.memory_space<vmem>>, vector<16x285xf32>
    %1 = arith.truncf %0 : vector<16x285xf32> to vector<16x285xbf16>
    %c0_1 = arith.constant 0 : index
    %c0_2 = arith.constant 0 : index
    %2 = vector.load %arg2[%c0_1, %c0_2] : memref<285x256xbf16, #tpu.memory_space<vmem>>, vector<285x256xbf16>
    %cst = arith.constant dense<0.000000e+00> : vector<16x256xf32>
    %3 = tpu.matmul %1, %2, %cst {dimension_numbers = #tpu.dot_dimension_numbers<[1], [0], [0], [1], [0, 0, 1, 1], [], []>} : vector<16x285xbf16>, vector<285x256xbf16>, vector<16x256xf32> -> vector<16x256xf32>
    %c0_3 = arith.constant 0 : index
    %c0_4 = arith.constant 0 : index
    %4 = vector.load %arg3[%c0_3, %c0_4] : memref<1x256xf32, #tpu.memory_space<vmem>>, vector<1x256xf32>
    %5 = vector.broadcast %4 : vector<1x256xf32> to vector<16x256xf32>
    %6 = arith.addf %3, %5 : vector<16x256xf32>
    %cst_5 = arith.constant 0.000000e+00 : f32
    %7 = vector.broadcast %cst_5 : f32 to vector<16x256xf32>
    %8 = arith.maximumf %6, %7 : vector<16x256xf32>
    %9 = arith.truncf %8 : vector<16x256xf32> to vector<16x256xbf16>
    %c0_6 = arith.constant 0 : index
    %c0_7 = arith.constant 0 : index
    %10 = vector.load %arg4[%c0_6, %c0_7] : memref<256x256xbf16, #tpu.memory_space<vmem>>, vector<256x256xbf16>
    %cst_8 = arith.constant dense<0.000000e+00> : vector<16x256xf32>
    %11 = tpu.matmul %9, %10, %cst_8 {dimension_numbers = #tpu.dot_dimension_numbers<[1], [0], [0], [1], [0, 0, 1, 1], [], []>} : vector<16x256xbf16>, vector<256x256xbf16>, vector<16x256xf32> -> vector<16x256xf32>
    %c0_9 = arith.constant 0 : index
    %c0_10 = arith.constant 0 : index
    %12 = vector.load %arg5[%c0_9, %c0_10] : memref<1x256xf32, #tpu.memory_space<vmem>>, vector<1x256xf32>
    %13 = vector.broadcast %12 : vector<1x256xf32> to vector<16x256xf32>
    %14 = arith.addf %11, %13 : vector<16x256xf32>
    %cst_11 = arith.constant 0.000000e+00 : f32
    %15 = vector.broadcast %cst_11 : f32 to vector<16x256xf32>
    %16 = arith.maximumf %14, %15 : vector<16x256xf32>
    %17 = arith.truncf %16 : vector<16x256xf32> to vector<16x256xbf16>
    %c0_12 = arith.constant 0 : index
    %c0_13 = arith.constant 0 : index
    %18 = vector.load %arg6[%c0_12, %c0_13] : memref<256x128xbf16, #tpu.memory_space<vmem>>, vector<256x128xbf16>
    %cst_14 = arith.constant dense<0.000000e+00> : vector<16x128xf32>
    %19 = tpu.matmul %17, %18, %cst_14 {dimension_numbers = #tpu.dot_dimension_numbers<[1], [0], [0], [1], [0, 0, 1, 1], [], []>} : vector<16x256xbf16>, vector<256x128xbf16>, vector<16x128xf32> -> vector<16x128xf32>
    %c0_15 = arith.constant 0 : index
    %c0_16 = arith.constant 0 : index
    %20 = vector.load %arg7[%c0_15, %c0_16] : memref<1x128xf32, #tpu.memory_space<vmem>>, vector<1x128xf32>
    %21 = vector.broadcast %20 : vector<1x128xf32> to vector<16x128xf32>
    %22 = arith.addf %19, %21 : vector<16x128xf32>
    %cst_17 = arith.constant dense<0xFF800000> : vector<16xf32>
    %23 = vector.multi_reduction <maximumf>, %22, %cst_17 [1] : vector<16x128xf32> to vector<16xf32>
    %24 = vector.shape_cast %23 : vector<16xf32> to vector<16x1xf32>
    %25 = vector.broadcast %24 : vector<16x1xf32> to vector<16x128xf32>
    %26 = arith.subf %22, %25 : vector<16x128xf32>
    %27 = math.exp %26 : vector<16x128xf32>
    %cst_18 = arith.constant dense<0.000000e+00> : vector<16xf32>
    %28 = vector.multi_reduction <add>, %27, %cst_18 [1] : vector<16x128xf32> to vector<16xf32>
    %29 = vector.shape_cast %28 : vector<16xf32> to vector<16x1xf32>
    %30 = vector.broadcast %29 : vector<16x1xf32> to vector<16x128xf32>
    %31 = arith.divf %27, %30 : vector<16x128xf32>
    %c0_19 = arith.constant 0 : index
    %c0_20 = arith.constant 0 : index
    %32 = vector.load %arg8[%c0_19, %c0_20] : memref<16x128xf32, #tpu.memory_space<vmem>>, vector<16x128xf32>
    tpu.vector_store %arg8[%c0_19, %c0_20], %31 {strides = array<i32>} : memref<16x128xf32, #tpu.memory_space<vmem>>, vector<16x128xf32>,
    return
  }
  func.func @transform_0(%arg0: i32) -> (i32, i32) {
    %c0_i32 = arith.constant 0 : i32
    %c0_i32_0 = arith.constant 0 : i32
    return %arg0, %c0_i32 : i32, i32
  }
  func.func @transform_1(%arg0: i32) -> (i32, i32) {
    %c0_i32 = arith.constant 0 : i32
    %c0_i32_0 = arith.constant 0 : i32
    %c0_i32_1 = arith.constant 0 : i32
    return %c0_i32, %c0_i32_0 : i32, i32
  }
  func.func @transform_2(%arg0: i32) -> (i32, i32) {
    %c0_i32 = arith.constant 0 : i32
    %c0_i32_0 = arith.constant 0 : i32
    %c0_i32_1 = arith.constant 0 : i32
    return %c0_i32, %c0_i32_0 : i32, i32
  }
  func.func @transform_3(%arg0: i32) -> (i32, i32) {
    %c0_i32 = arith.constant 0 : i32
    %c0_i32_0 = arith.constant 0 : i32
    %c0_i32_1 = arith.constant 0 : i32
    return %c0_i32, %c0_i32_0 : i32, i32
  }
  func.func @transform_4(%arg0: i32) -> (i32, i32) {
    %c0_i32 = arith.constant 0 : i32
    %c0_i32_0 = arith.constant 0 : i32
    %c0_i32_1 = arith.constant 0 : i32
    return %c0_i32, %c0_i32_0 : i32, i32
  }
  func.func @transform_5(%arg0: i32) -> (i32, i32) {
    %c0_i32 = arith.constant 0 : i32
    %c0_i32_0 = arith.constant 0 : i32
    %c0_i32_1 = arith.constant 0 : i32
    return %c0_i32, %c0_i32_0 : i32, i32
  }
  func.func @transform_6(%arg0: i32) -> (i32, i32) {
    %c0_i32 = arith.constant 0 : i32
    %c0_i32_0 = arith.constant 0 : i32
    %c0_i32_1 = arith.constant 0 : i32
    return %c0_i32, %c0_i32_0 : i32, i32
  }
  func.func @transform_7(%arg0: i32) -> (i32, i32) {
    %c0_i32 = arith.constant 0 : i32
    %c0_i32_0 = arith.constant 0 : i32
    return %arg0, %c0_i32 : i32, i32
  }
}

</mosaic_0001>

<bundles_post_ra>
// kernel: tpu_custom_call.1
= control target key start
LH: loop header
LB: loop body
LE: loop exit
PB: predicated region body
PF: predicated region fallthrough
CT: control target
= control target key end

     0   :  { %12 = vsyncpa [#allocation3], 0  ;;  %s1616_s0 = inlined_call_operand.hbm [shape: f32[16,285], index: 0, kind: input, shape index: {}]   ;;  %s1617_s1 = inlined_call_operand.hbm [shape: bf16[285,256], index: 1, kind: input, shape index: {}]   ;;  %s1618_s2 = inlined_call_operand.hbm [shape: f32[1,256], index: 2, kind: input, shape index: {}]   ;;  %s1619_s3 = inlined_call_operand.hbm [shape: bf16[256,256], index: 3, kind: input, shape index: {}]   ;;  %s1620_s4 = inlined_call_operand.vmem [shape: f32[1,256], index: 4, kind: input, shape index: {}]   ;;  %s1621_s5 = inlined_call_operand.hbm [shape: bf16[256,128], index: 5, kind: input, shape index: {}]   ;;  %s1622_s6 = inlined_call_operand.vmem [shape: f32[1,128], index: 6, kind: input, shape index: {}]   ;;  %s1623_s7 = inlined_call_operand.hbm [shape: f32[16,128], index: 7, kind: output, shape index: {}]  }
   0x1   :  { %13 = vsyncpa [#allocation6], 0 }
   0x2   :  { %14 = vsyncpa [#allocation9], 0  ;;  %s33_s26 = sshll.u32 %s1617_s1, 4  ;;  %s34_s26 = int_to_ptr.hbm [resolvable:$true] %s33_s26 }
   0x3   :  { %15 = vsyncpa [#allocation4], 0  ;;  %s1520_s27 = smov [#allocation5]   ;;  %s57_s8 = sshll.u32 %s1619_s3, 4  ;;  %s58_s8 = int_to_ptr.hbm [resolvable:$true] %s57_s8 }
   0x4   :  { %s35_s28 = sshll.u32 %s1520_s27, 4  ;;  %s1521_s9 = smov 128   ;;  %s36_s28 = int_to_ptr.vmem [resolvable:$true] %s35_s28 }
   0x5   :  { %s1522_s10 = smov 8   ;;  %s1523_s11 = smov [#allocation8]  }
   0x6   :  { %41 = dma.hbm_to_vmem [thread:$0]  %s34_s26, 4608, %s36_s28, [#allocation6], %s1521_s9, %s1521_s9, %s1522_s10  }
   0x7   :  { %s59_s12 = sshll.u32 %s1523_s11, 4  ;;  %s20_s14 = sshll.u32 %s1616_s0, 4  ;;  %s60_s12 = int_to_ptr.vmem [resolvable:$true] %s59_s12  ;;  %s21_s14 = int_to_ptr.hbm [resolvable:$true] %s20_s14 }
   0x8   :  { %65 = dma.hbm_to_vmem [thread:$0]  %s58_s8, 4096, %s60_s12, [#allocation9], %s1521_s9, %s1521_s9, %s1522_s10  }
   0x9   :  { %s1524_s3 = smov [#allocation2]   ;;  %s47_s18 = sshll.u32 %s1618_s2, 4  ;;  %s48_s18 = int_to_ptr.hbm [resolvable:$true] %s47_s18 }
   0xa   :  { %s22_s15 = sshll.u32 %s1524_s3, 4  ;;  %s1525_s19 = smov 384   ;;  %s23_s15 = int_to_ptr.vmem [resolvable:$true] %s22_s15 }
   0xb   :  { %s1526_s20 = smov 24   ;;  %s1527_s21 = smov [#allocation7]  }
   0xc   :  { %28 = dma.hbm_to_vmem [thread:$0]  %s21_s14, 768, %s23_s15, [#allocation3], %s1525_s19, %s1525_s19, %s1526_s20  }
   0xd   :  { %s49_s22 = sshll.u32 %s1527_s21, 4  ;;  %s72_s24 = sshll.u32 %s1621_s5, 4  ;;  %s50_s22 = int_to_ptr.vmem [resolvable:$true] %s49_s22  ;;  %s73_s24 = int_to_ptr.hbm [resolvable:$true] %s72_s24 }
   0xe   :  { %52 = dma.hbm_to_vmem [thread:$0]  %s48_s18, 32, %s50_s22, [#allocation6]  }
   0xf   :  { %s1528_s25 = smov [#allocation10]   ;;  %s1529_s27 = smov 64  }
  0x10   :  { %s74_s26 = sshll.u32 %s1528_s25, 4  ;;  %s1530_s28 = smov 4   ;;  %s75_s26 = int_to_ptr.vmem [resolvable:$true] %s74_s26 }
  0x11   :  { %80 = dma.hbm_to_vmem [thread:$0]  %s73_s24, 2048, %s75_s26, [#allocation9], %s1529_s27, %s1529_s27, %s1530_s28  }
  0x12   :  { %1512 = dma.done.wait [#allocation3], 768  }
  0x13   :  { %1513 = vsyncadd [#allocation3], 4294966528 }
  0x14   :  { %1514 = dma.done.wait [#allocation6], 4640  }
  0x15   :  { %1515 = vsyncadd [#allocation6], 4294962656 }
  0x16   :  { %1516 = dma.done.wait [#allocation9], 6144  }
  0x17   :  { %1517 = vsyncadd [#allocation9], 4294961152  ;;  %vm337_vm0 = vcmask 1045504   ;;  %vm338_vm1 = vcmask 1046528   ;;  %v1531_v0 = vmov 65535   ;;  %v106_v48 = vld [vmem:[#allocation2 + $0x10] sm:$0xff] }
  0x18   :  { %v339_v1 = vsel %vm337_vm0, 4294967295, %v1531_v0  ;;  %v982_v3 = vld [vmem:[#allocation5 + $0x70] sm:$0xf]  ;;  %v1277_v4 = vld [vmem:[#allocation5 + $0x74] sm:$0xf0]  ;;  %vm333_vm2 = vcmask 236544  }
  0x19   :  { %v1594_v2 = vsel %vm338_vm1, %v339_v1, 0  ;;  %v1046_v5 = vld [vmem:[#allocation5 + $0xf0] sm:$0xf]  ;;  %v983_v6 = vor.u32 %v1277_v4, %v982_v3  ;;  %v1293_v7 = vld [vmem:[#allocation5 + $0xf4] sm:$0xf0]  ;;  %s909_s12 = sshll.u32 %s1623_s7, 4  ;;  %s910_s12 = int_to_ptr.hbm [resolvable:$true] %s909_s12 }
  0x1a   :  { %v1276_v8 = vld [vmem:[#allocation5 + $0x74] sm:$0xf]  ;;  %v984_v9 = vld [vmem:[#allocation5 + $0x78] sm:$0xf0]  ;;  %v1047_v10 = vor.u32 %v1293_v7, %v1046_v5  ;;  %v1062_v12 = vld [vmem:[#allocation5 + $0x110] sm:$0xf] }
  0x1b   :  { %v987_v11 = vor.u32 %v1276_v8, %v984_v9  ;;  %v1297_v13 = vld [vmem:[#allocation5 + $0x114] sm:$0x70]  ;;  %v974_v14 = vld [vmem:[#allocation5 + $0x60] sm:$0xf]  ;;  %347 = vmatpush.bf16.msra.mxu0 %v983_v6  ;;  %v1275_v16 = vld [vmem:[#allocation5 + $0x64] sm:$0xf0] }
  0x1c   :  { %v1063_v15 = vor.u32 %v1297_v13, %v1062_v12  ;;  %v1038_v17 = vld [vmem:[#allocation5 + $0xe0] sm:$0xf]  ;;  %v1291_v18 = vld [vmem:[#allocation5 + $0xe4] sm:$0xf0]  ;;  %361 = vmatpush.bf16.msra.mxu1 %v1047_v10  ;;  %v975_v19 = vor.u32 %v1275_v16, %v974_v14  ;;  %v1274_v21 = vld [vmem:[#allocation5 + $0x64] sm:$0xf] }
  0x1d   :  { %389 = vmatpush.bf16.msra.mxu3 %v987_v11  ;;  %v1039_v20 = vor.u32 %v1291_v18, %v1038_v17  ;;  %v976_v22 = vld [vmem:[#allocation5 + $0x68] sm:$0xf0]  ;;  %v1054_v23 = vld [vmem:[#allocation5 + $0x100] sm:$0xf]  ;;  %v1295_v26 = vld [vmem:[#allocation5 + $0x104] sm:$0xf0] }
  0x1e   :  { %v342_v24 = vand.u32 %v1063_v15, %v1594_v2  ;;  %v979_v25 = vor.u32 %v1274_v21, %v976_v22  ;;  %v1292_v27 = vld [vmem:[#allocation5 + $0xf4] sm:$0xf]  ;;  %v1048_v28 = vld [vmem:[#allocation5 + $0xf8] sm:$0xf0]  ;;  %v966_v29 = vld [vmem:[#allocation5 + $0x50] sm:$0xf]  ;;  %v1055_v32 = vor.u32 %v1295_v26, %v1054_v23 }
  0x1f   :  { %v1273_v30 = vld [vmem:[#allocation5 + $0x54] sm:$0xf0]  ;;  %v1030_v31 = vld [vmem:[#allocation5 + $0xd0] sm:$0xf]  ;;  %348 = vmatpush.bf16.msra.mxu0 %v975_v19  ;;  %v1272_v35 = vld [vmem:[#allocation5 + $0x54] sm:$0xf]  ;;  %v1051_v37 = vor.u32 %v1292_v27, %v1048_v28 }
  0x20   :  { %381 = vmatpush.bf16.msra.mxu2 %v342_v24  ;;  %v967_v33 = vor.u32 %v1273_v30, %v966_v29  ;;  %v1289_v34 = vld [vmem:[#allocation5 + $0xd4] sm:$0xf0]  ;;  %v968_v36 = vld [vmem:[#allocation5 + $0x58] sm:$0xf0]  ;;  %362 = vmatpush.bf16.msra.mxu1 %v1039_v20  ;;  %v1290_v39 = vld [vmem:[#allocation5 + $0xe4] sm:$0xf] }
  0x21   :  { %390 = vmatpush.bf16.msra.mxu3 %v979_v25  ;;  %v1031_v38 = vor.u32 %v1289_v34, %v1030_v31  ;;  %v1040_v40 = vld [vmem:[#allocation5 + $0xe8] sm:$0xf0]  ;;  %v958_v41 = vld [vmem:[#allocation5 + $0x40] sm:$0xf]  ;;  %v971_v42 = vor.u32 %v1272_v35, %v968_v36  ;;  %v1271_v43 = vld [vmem:[#allocation5 + $0x44] sm:$0xf0] }
  0x22   :  { %v1022_v44 = vld [vmem:[#allocation5 + $0xc0] sm:$0xf]  ;;  %v1287_v45 = vld [vmem:[#allocation5 + $0xc4] sm:$0xf0]  ;;  %v1270_v46 = vld [vmem:[#allocation5 + $0x44] sm:$0xf]  ;;  %v959_v49 = vor.u32 %v1271_v43, %v958_v41  ;;  %v1043_v51 = vor.u32 %v1290_v39, %v1040_v40 }
  0x23   :  { %v960_v47 = vld [vmem:[#allocation5 + $0x48] sm:$0xf0]  ;;  %349 = vmatpush.bf16.msra.mxu0 %v967_v33  ;;  %v109_v50 = vld [vmem:[#allocation2 + $0x28] sm:$0xff]  ;;  %v1023_v52 = vor.u32 %v1287_v45, %v1022_v44  ;;  %v1288_v54 = vld [vmem:[#allocation5 + $0xd4] sm:$0xf] }
  0x24   :  { %382 = vmatpush.bf16.msra.mxu2 %v1055_v32  ;;  %363 = vmatpush.bf16.msra.mxu1 %v1031_v38  ;;  %v1597_v53 = vpack.c.bf16 %v109_v50, %v106_v48  ;;  %v950_v55 = vld [vmem:[#allocation5 + $0x30] sm:$0xf]  ;;  %v1269_v56 = vld [vmem:[#allocation5 + $0x34] sm:$0xf0]  ;;  %v963_v57 = vor.u32 %v1270_v46, %v960_v47  ;;  %v1032_v58 = vld [vmem:[#allocation5 + $0xd8] sm:$0xf0] }
  0x25   :  { %391 = vmatpush.bf16.msra.mxu3 %v971_v42  ;;  %v1014_v59 = vld [vmem:[#allocation5 + $0xb0] sm:$0xf]  ;;  %v1285_v60 = vld [vmem:[#allocation5 + $0xb4] sm:$0xf0]  ;;  %v1268_v61 = vld [vmem:[#allocation5 + $0x34] sm:$0xf]  ;;  %v951_v63 = vor.u32 %v1269_v56, %v950_v55  ;;  %v1035_v0 = vor.u32 %v1288_v54, %v1032_v58 }
  0x26   :  { %v952_v62 = vld [vmem:[#allocation5 + $0x38] sm:$0xf0]  ;;  %v1015_v1 = vor.u32 %v1285_v60, %v1014_v59  ;;  %v1286_v3 = vld [vmem:[#allocation5 + $0xc4] sm:$0xf]  ;;  %v942_v4 = vld [vmem:[#allocation5 + $0x20] sm:$0xf] }
  0x27   :  { %1068 = vmatmul.msk.bf16.vlgmr.msra.gmra.mxu2 %vm333_vm2, %v1597_v53  ;;  %350 = vmatpush.bf16.msra.mxu0 %v959_v49  ;;  %v1267_v5 = vld [vmem:[#allocation5 + $0x24] sm:$0xf0]  ;;  %v955_v6 = vor.u32 %v1268_v61, %v952_v62  ;;  %v1024_v7 = vld [vmem:[#allocation5 + $0xc8] sm:$0xf0]  ;;  %v1006_v8 = vld [vmem:[#allocation5 + $0xa0] sm:$0xf] }
  0x28   :  { %403 = vmatpush.bf16.msrb.mxu2 %v1051_v37  ;;  %364 = vmatpush.bf16.msra.mxu1 %v1023_v52  ;;  %v1283_v9 = vld [vmem:[#allocation5 + $0xa4] sm:$0xf0]  ;;  %v1266_v10 = vld [vmem:[#allocation5 + $0x24] sm:$0xf]  ;;  %v944_v11 = vld [vmem:[#allocation5 + $0x28] sm:$0xf0]  ;;  %v943_v12 = vor.u32 %v1267_v5, %v942_v4  ;;  %v1027_v13 = vor.u32 %v1286_v3, %v1024_v7 }
  0x29   :  { %392 = vmatpush.bf16.msra.mxu3 %v963_v57  ;;  %v1007_v14 = vor.u32 %v1283_v9, %v1006_v8  ;;  %v1284_v15 = vld [vmem:[#allocation5 + $0xb4] sm:$0xf]  ;;  %v934_v16 = vld [vmem:[#allocation5 + $0x10] sm:$0xf]  ;;  %v1265_v17 = vld [vmem:[#allocation5 + $0x14] sm:$0xf0]  ;;  %v947_v18 = vor.u32 %v1266_v10, %v944_v11 }
  0x2a   :  { %v1016_v19 = vld [vmem:[#allocation5 + $0xb8] sm:$0xf0]  ;;  %v998_v20 = vld [vmem:[#allocation5 + $0x90] sm:$0xf]  ;;  %v1281_v21 = vld [vmem:[#allocation5 + $0x94] sm:$0xf0]  ;;  %v935_v24 = vor.u32 %v1265_v17, %v934_v16 }
  0x2b   :  { %351 = vmatpush.bf16.msra.mxu0 %v951_v63  ;;  %v1264_v22 = vld [vmem:[#allocation5 + $0x14] sm:$0xf]  ;;  %v936_v23 = vld [vmem:[#allocation5 + $0x18] sm:$0xf0]  ;;  %v1282_v25 = vld [vmem:[#allocation5 + $0xa4] sm:$0xf]  ;;  %v1019_v28 = vor.u32 %v1284_v15, %v1016_v19  ;;  %v999_v29 = vor.u32 %v1281_v21, %v998_v20 }
  0x2c   :  { %404 = vmatpush.bf16.msrb.mxu2 %v1043_v51  ;;  %365 = vmatpush.bf16.msra.mxu1 %v1015_v1  ;;  %v1008_v26 = vld [vmem:[#allocation5 + $0xa8] sm:$0xf0]  ;;  %v926_v27 = vld [vmem:[#allocation5] sm:$0xf]  ;;  %v1263_v30 = vld [vmem:[#allocation5 + $0x4] sm:$0xf0]  ;;  %v939_v33 = vor.u32 %v1264_v22, %v936_v23 }
  0x2d   :  { %393 = vmatpush.bf16.msra.mxu3 %v955_v6  ;;  %v1296_v31 = vld [vmem:[#allocation5 + $0x114] sm:$0xf]  ;;  %v1064_v32 = vld [vmem:[#allocation5 + $0x118] sm:$0x70]  ;;  %v990_v34 = vld [vmem:[#allocation5 + $0x80] sm:$0xf]  ;;  %v927_v41 = vor.u32 %v1263_v30, %v926_v27  ;;  %v1011_v44 = vor.u32 %v1282_v25, %v1008_v26 }
  0x2e   :  { %v1279_v35 = vld [vmem:[#allocation5 + $0x84] sm:$0xf0]  ;;  %v1262_v36 = vld [vmem:[#allocation5 + $0x4] sm:$0xf]  ;;  %v1067_v37 = vor.u32 %v1296_v31, %v1064_v32  ;;  %v928_v38 = vld [vmem:[#allocation5 + $0x8] sm:$0xf0] }
  0x2f   :  { %352 = vmatpush.bf16.msra.mxu0 %v943_v12  ;;  %v104_v39 = vld [vmem:[#allocation2] sm:$0xff]  ;;  %v107_v40 = vld [vmem:[#allocation2 + $0x18] sm:$0xff]  ;;  %v1313_v43 = vld [vmem:[#allocation8 + $0x74] sm:$0xf0]  ;;  %v991_v45 = vor.u32 %v1279_v35, %v990_v34  ;;  %v931_v48 = vor.u32 %v1262_v36, %v928_v38 }
  0x30   :  { %405 = vmatpush.bf16.msrb.mxu2 %v1035_v0  ;;  %366 = vmatpush.bf16.msra.mxu1 %v1007_v14  ;;  %v1128_v42 = vld [vmem:[#allocation8 + $0x70] sm:$0xf]  ;;  %v105_v46 = vld [vmem:[#allocation2 + $0x8] sm:$0xff]  ;;  %v345_v51 = vand.u32 %v1067_v37, %v1594_v2  ;;  %v110_v52 = vpack.c.bf16 %v107_v40, %v104_v39  ;;  %v1294_v54 = vld [vmem:[#allocation5 + $0x104] sm:$0xf] }
  0x31   :  { %394 = vmatpush.bf16.msra.mxu3 %v947_v18  ;;  %v108_v47 = vld [vmem:[#allocation2 + $0x20] sm:$0xff]  ;;  %v1000_v50 = vld [vmem:[#allocation5 + $0x98] sm:$0xf0]  ;;  %v1056_v55 = vld [vmem:[#allocation5 + $0x108] sm:$0xf0]  ;;  %v1129_v56 = vor.u32 %v1313_v43, %v1128_v42 }
  0x32   :  { %v1280_v49 = vld [vmem:[#allocation5 + $0x94] sm:$0xf]  ;;  %v111_v57 = vpack.c.bf16 %v108_v47, %v105_v46  ;;  %v1278_v59 = vld [vmem:[#allocation5 + $0x84] sm:$0xf]  ;;  %v992_v60 = vld [vmem:[#allocation5 + $0x88] sm:$0xf0]  ;;  %v1059_v61 = vor.u32 %v1294_v54, %v1056_v55 }
  0x33   :  { %353 = vmatpush.bf16.msra.mxu0 %v935_v24  ;;  %v1003_v58 = vor.u32 %v1280_v49, %v1000_v50  ;;  %v1312_v62 = vld [vmem:[#allocation8 + $0x74] sm:$0xf]  ;;  %v1130_v63 = vld [vmem:[#allocation8 + $0x78] sm:$0xf0]  ;;  %v995_v2 = vor.u32 %v1278_v59, %v992_v60  ;;  %v1120_v1 = vld [vmem:[#allocation8 + $0x60] sm:$0xf] }
  0x34   :  { %406 = vmatpush.bf16.msrb.mxu2 %v1027_v13  ;;  %367 = vmatpush.bf16.msra.mxu1 %v999_v29  ;;  %v1133_v0 = vor.u32 %v1312_v62, %v1130_v63  ;;  %v1311_v3 = vld [vmem:[#allocation8 + $0x64] sm:$0xf0]  ;;  %v1310_v4 = vld [vmem:[#allocation8 + $0x64] sm:$0xf]  ;;  %v1122_v6 = vld [vmem:[#allocation8 + $0x68] sm:$0xf0] }
  0x35   :  { %395 = vmatpush.bf16.msra.mxu3 %v939_v33  ;;  %v1121_v5 = vor.u32 %v1311_v3, %v1120_v1  ;;  %v1112_v7 = vld [vmem:[#allocation8 + $0x50] sm:$0xf]  ;;  %v1309_v8 = vld [vmem:[#allocation8 + $0x54] sm:$0xf0]  ;;  %v1125_v9 = vor.u32 %v1310_v4, %v1122_v6  ;;  %v1308_v10 = vld [vmem:[#allocation8 + $0x54] sm:$0xf] }
  0x36   :  { %v1114_v11 = vld [vmem:[#allocation8 + $0x58] sm:$0xf0]  ;;  %v1113_v12 = vor.u32 %v1309_v8, %v1112_v7  ;;  %v1104_v14 = vld [vmem:[#allocation8 + $0x40] sm:$0xf]  ;;  %v1307_v15 = vld [vmem:[#allocation8 + $0x44] sm:$0xf0] }
  0x37   :  { %354 = vmatpush.bf16.msra.mxu0 %v927_v41  ;;  %v1117_v13 = vor.u32 %v1308_v10, %v1114_v11  ;;  %v1192_v16 = vld [vmem:[#allocation8 + $0xf0] sm:$0xf]  ;;  %v1329_v17 = vld [vmem:[#allocation8 + $0xf4] sm:$0xf0]  ;;  %v1306_v18 = vld [vmem:[#allocation8 + $0x44] sm:$0xf] }
  0x38   :  { %407 = vmatpush.bf16.msrb.mxu2 %v1019_v28  ;;  %368 = vmatpush.bf16.msra.mxu1 %v991_v45  ;;  %v1106_v19 = vld [vmem:[#allocation8 + $0x48] sm:$0xf0]  ;;  %v1193_v20 = vor.u32 %v1329_v17, %v1192_v16  ;;  %v1328_v22 = vld [vmem:[#allocation8 + $0xf4] sm:$0xf]  ;;  %v1194_v23 = vld [vmem:[#allocation8 + $0xf8] sm:$0xf0] }
  0x39   :  { %396 = vmatpush.bf16.msra.mxu3 %v931_v48  ;;  %v1109_v21 = vor.u32 %v1306_v18, %v1106_v19  ;;  %v1197_v24 = vor.u32 %v1328_v22, %v1194_v23  ;;  %v1096_v25 = vld [vmem:[#allocation8 + $0x30] sm:$0xf]  ;;  %v1305_v26 = vld [vmem:[#allocation8 + $0x34] sm:$0xf0]  ;;  %v1184_v27 = vld [vmem:[#allocation8 + $0xe0] sm:$0xf] }
  0x3a   :  { %355 = vmatmul.bf16.vlgmr.msra.gmra.mxu0 %v110_v52  ;;  %v1097_v28 = vor.u32 %v1305_v26, %v1096_v25  ;;  %v1327_v29 = vld [vmem:[#allocation8 + $0xe4] sm:$0xf0]  ;;  %v1304_v30 = vld [vmem:[#allocation8 + $0x34] sm:$0xf]  ;;  %v1098_v31 = vld [vmem:[#allocation8 + $0x38] sm:$0xf0] }
  0x3b   :  { %423 = vmatpush.bf16.msrb.mxu0 %v345_v51  ;;  %369 = vmatmul.bf16.vlgmr.msra.gmra.mxu1 %v111_v57  ;;  %v1185_v32 = vor.u32 %v1327_v29, %v1184_v27  ;;  %v1101_v33 = vor.u32 %v1304_v30, %v1098_v31  ;;  %v1326_v34 = vld [vmem:[#allocation8 + $0xe4] sm:$0xf]  ;;  %v1186_v35 = vld [vmem:[#allocation8 + $0xe8] sm:$0xf0]  ;;  %v1088_v37 = vld [vmem:[#allocation8 + $0x20] sm:$0xf] }
  0x3c   :  { %408 = vmatpush.bf16.msrb.mxu2 %v1011_v44  ;;  %635 = vmatpush.bf16.msrb.mxu1 %v1129_v56  ;;  %v1189_v36 = vor.u32 %v1326_v34, %v1186_v35  ;;  %v1303_v38 = vld [vmem:[#allocation8 + $0x24] sm:$0xf0]  ;;  %v1176_v40 = vld [vmem:[#allocation8 + $0xd0] sm:$0xf]  ;;  %v1325_v41 = vld [vmem:[#allocation8 + $0xd4] sm:$0xf0] }
  0x3d   :  { %397 = vmatmul.bf16.vlgmr.msra.gmra.mxu3 %v110_v52  ;;  %v1089_v39 = vor.u32 %v1303_v38, %v1088_v37  ;;  %v1302_v42 = vld [vmem:[#allocation8 + $0x24] sm:$0xf]  ;;  %v1177_v43 = vor.u32 %v1325_v41, %v1176_v40  ;;  %v1090_v44 = vld [vmem:[#allocation8 + $0x28] sm:$0xf0]  ;;  %v1324_v45 = vld [vmem:[#allocation8 + $0xd4] sm:$0xf] }
  0x3e   :  { %649 = vmatpush.bf16.msrb.mxu3 %v1193_v20  ;;  %v1178_v46 = vld [vmem:[#allocation8 + $0xd8] sm:$0xf0]  ;;  %v1093_v47 = vor.u32 %v1302_v42, %v1090_v44  ;;  %v1080_v49 = vld [vmem:[#allocation8 + $0x10] sm:$0xf]  ;;  %v1301_v50 = vld [vmem:[#allocation8 + $0x14] sm:$0xf0] }
  0x3f   :  { %424 = vmatpush.bf16.msrb.mxu0 %v1059_v61  ;;  %v1181_v48 = vor.u32 %v1324_v45, %v1178_v46  ;;  %v1168_v51 = vld [vmem:[#allocation8 + $0xc0] sm:$0xf]  ;;  %v1081_v52 = vor.u32 %v1301_v50, %v1080_v49  ;;  %v1323_v54 = vld [vmem:[#allocation8 + $0xc4] sm:$0xf0]  ;;  %v1300_v55 = vld [vmem:[#allocation8 + $0x14] sm:$0xf] }
  0x40   :  { %409 = vmatpush.bf16.msrb.mxu2 %v1003_v58  ;;  %636 = vmatpush.bf16.msrb.mxu1 %v1121_v5  ;;  %v1082_v56 = vld [vmem:[#allocation8 + $0x18] sm:$0xf0]  ;;  %v1322_v59 = vld [vmem:[#allocation8 + $0xc4] sm:$0xf]  ;;  %v1170_v60 = vld [vmem:[#allocation8 + $0xc8] sm:$0xf0] }
  0x41   :  { %v1085_v58 = vor.u32 %v1300_v55, %v1082_v56  ;;  %v1173_v61 = vor.u32 %v1322_v59, %v1170_v60  ;;  %v1072_v62 = vld [vmem:[#allocation8] sm:$0xf]  ;;  %v1299_v63 = vld [vmem:[#allocation8 + $0x4] sm:$0xf0]  ;;  %v1321_v1 = vld [vmem:[#allocation8 + $0xb4] sm:$0xf0] }
  0x42   :  { %650 = vmatpush.bf16.msrb.mxu3 %v1185_v32  ;;  %v1298_v3 = vld [vmem:[#allocation8 + $0x4] sm:$0xf]  ;;  %v1074_v4 = vld [vmem:[#allocation8 + $0x8] sm:$0xf0]  ;;  %v1320_v7 = vld [vmem:[#allocation8 + $0xb4] sm:$0xf] }
  0x43   :  { %677 = vmatpush.bf16.msra.mxu0 %v1197_v24  ;;  %v1077_v6 = vor.u32 %v1298_v3, %v1074_v4  ;;  %v1162_v8 = vld [vmem:[#allocation8 + $0xb8] sm:$0xf0]  ;;  %v1152_v10 = vld [vmem:[#allocation8 + $0xa0] sm:$0xf]  ;;  %v1319_v11 = vld [vmem:[#allocation8 + $0xa4] sm:$0xf0] }
  0x44   :  { %410 = vmatpush.bf16.msrb.mxu2 %v995_v2  ;;  %637 = vmatpush.bf16.msrb.mxu1 %v1113_v12  ;;  %v1160_v2 = vld [vmem:[#allocation8 + $0xb0] sm:$0xf]  ;;  %v1318_v12 = vld [vmem:[#allocation8 + $0xa4] sm:$0xf]  ;;  %v1316_v17 = vld [vmem:[#allocation8 + $0x94] sm:$0xf] }
  0x45   :  { %v1161_v5 = vor.u32 %v1321_v1, %v1160_v2  ;;  %v1144_v16 = vld [vmem:[#allocation8 + $0x90] sm:$0xf]  ;;  %v1146_v19 = vld [vmem:[#allocation8 + $0x98] sm:$0xf0]  ;;  %v1315_v22 = vld [vmem:[#allocation8 + $0x84] sm:$0xf0] }
  0x46   :  { %651 = vmatpush.bf16.msrb.mxu3 %v1177_v43  ;;  %v1149_v20 = vor.u32 %v1316_v17, %v1146_v19  ;;  %v1314_v23 = vld [vmem:[#allocation8 + $0x84] sm:$0xf]  ;;  %v149_v24 = vld [vmem:[#allocation7] sm:$0x3]  ;;  %v1138_v26 = vld [vmem:[#allocation8 + $0x88] sm:$0xf0] }
  0x47   :  { %411 = vmatmul.bf16.vlgmr.msrb.gmra.mxu2 %v111_v57  ;;  %678 = vmatpush.bf16.msra.mxu0 %v1189_v36  ;;  %v1169_v57 = vor.u32 %v1323_v54, %v1168_v51  ;;  %v151_v29 = vperm.slane %v149_v24, 0  ;;  %v1345_v31 = vld [vmem:[#allocation10 + $0x78] sm:$0xff]  ;;  %v152_v42 = vperm.slane %v149_v24, 1  ;;  %v1343_v2 = vld [vmem:[#allocation10 + $0x68] sm:$0xff]  ;;  %v1342_v1 = vld [vmem:[#allocation10 + $0x60] sm:$0xff] }
  0x48   :  { %663 = vmatpush.bf16.msra.mxu2 %v1133_v0  ;;  %v1073_v0 = vor.u32 %v1299_v63, %v1072_v62  ;;  %v1344_v62 = vld [vmem:[#allocation10 + $0x70] sm:$0xff]  ;;  %v1337_v63 = vld [vmem:[#allocation10 + $0x38] sm:$0xff]  ;;  %v1335_v3 = vld [vmem:[#allocation10 + $0x28] sm:$0xff] }
  0x49   :  { %v1341_v4 = vld [vmem:[#allocation10 + $0x58] sm:$0xff] }
  0x4a   :  { %1069 = vmatmul.msk.bf16.vlgmr.msrb.gmra.mxu0 %vm333_vm2, %v1597_v53  ;;  %v1105_v53 = vor.u32 %v1307_v15, %v1104_v14  ;;  %652 = vmatpush.bf16.msrb.mxu3 %v1169_v57  ;;  %v1154_v14 = vld [vmem:[#allocation8 + $0xa8] sm:$0xf0] }
  0x4b   :  { %679 = vmatpush.bf16.msra.mxu0 %v1181_v48  ;;  %v1157_v15 = vor.u32 %v1318_v12, %v1154_v14  ;;  %v1330_v12 = vld [vmem:[#allocation10] sm:$0xff]  ;;  %v469_v14 = vld [vmem:[%s1620_s4] sm:$0x3] }
  0x4c   :  { %664 = vmatpush.bf16.msra.mxu2 %v1125_v9  ;;  %638 = vmatpush.bf16.msrb.mxu1 %v1105_v53  ;;  %v1165_v9 = vor.u32 %v1320_v7, %v1162_v8  ;;  %v1317_v53 = vld [vmem:[#allocation8 + $0x94] sm:$0xf0]  ;;  %v1339_v8 = vld [vmem:[#allocation10 + $0x48] sm:$0xff] }
  0x4d   :  { %v1145_v18 = vor.u32 %v1317_v53, %v1144_v16  ;;  %v1333_v7 = vld [vmem:[#allocation10 + $0x18] sm:$0xff]  ;;  %v472_v53 = vperm.slane %v469_v14, 1 }
  0x4e   :  { %653 = vmatpush.bf16.msrb.mxu3 %v1161_v5  ;;  %v1334_v5 = vld [vmem:[#allocation10 + $0x20] sm:$0xff] }
  0x4f   :  { %680 = vmatpush.bf16.msra.mxu0 %v1173_v61 }
  0x50   :  { %665 = vmatpush.bf16.msra.mxu2 %v1117_v13  ;;  %639 = vmatpush.bf16.msrb.mxu1 %v1097_v28  ;;  %v1153_v13 = vor.u32 %v1319_v11, %v1152_v10  ;;  %v1141_v28 = vor.u32 %v1314_v23, %v1138_v26  ;;  %v1338_v10 = vld [vmem:[#allocation10 + $0x40] sm:$0xff]  ;;  %v1331_v11 = vld [vmem:[#allocation10 + $0x8] sm:$0xff] }
  0x52   :  { %654 = vmatpush.bf16.msrb.mxu3 %v1153_v13 }
  0x53   :  { %681 = vmatpush.bf16.msra.mxu0 %v1165_v9  ;;  %v1332_v9 = vld [vmem:[#allocation10 + $0x10] sm:$0xff] }
  0x54   :  { %666 = vmatpush.bf16.msra.mxu2 %v1109_v21  ;;  %640 = vmatpush.bf16.msrb.mxu1 %v1089_v39  ;;  %v1136_v21 = vld [vmem:[#allocation8 + $0x80] sm:$0xf] }
  0x55   :  { %v1137_v25 = vor.u32 %v1315_v22, %v1136_v21 }
  0x56   :  { %655 = vmatpush.bf16.msrb.mxu3 %v1145_v18 }
  0x57   :  { %682 = vmatpush.bf16.msra.mxu0 %v1157_v15 }
  0x58   :  { %667 = vmatpush.bf16.msra.mxu2 %v1101_v33  ;;  %641 = vmatpush.bf16.msrb.mxu1 %v1081_v52 }
  0x5a   :  { %656 = vmatpush.bf16.msrb.mxu3 %v1137_v25 }
  0x5b   :  { %683 = vmatpush.bf16.msra.mxu0 %v1149_v20  ;;  %v471_v20 = vperm.slane %v469_v14, 0 }
  0x5c   :  { %668 = vmatpush.bf16.msra.mxu2 %v1093_v47  ;;  %642 = vmatpush.bf16.msrb.mxu1 %v1073_v0  ;;  %v1336_v0 = vld [vmem:[#allocation10 + $0x30] sm:$0xff] }
  0x5e   :  { %843 = vmatpush.bf16.msra.mxu3 %v1345_v31 }
  0x5f   :  { %684 = vmatpush.bf16.msra.mxu0 %v1141_v28 }
  0x60   :  { %669 = vmatpush.bf16.msra.mxu2 %v1085_v58  ;;  %829 = vmatpush.bf16.msra.mxu1 %v1337_v63 }
  0x62   :  { %844 = vmatpush.bf16.msra.mxu3 %v1344_v62 }
  0x64   :  { %670 = vmatpush.bf16.msra.mxu2 %v1077_v6  ;;  %830 = vmatpush.bf16.msra.mxu1 %v1336_v0  ;;  %v1340_v6 = vld [vmem:[#allocation10 + $0x50] sm:$0xff] }
  0x66   :  { %845 = vmatpush.bf16.msra.mxu3 %v1343_v2 }
  0x68   :  { %831 = vmatpush.bf16.msra.mxu1 %v1335_v3 }
  0x6a   :  { %846 = vmatpush.bf16.msra.mxu3 %v1342_v1 }
  0x6c   :  { %832 = vmatpush.bf16.msra.mxu1 %v1334_v5 }
  0x6e   :  { %847 = vmatpush.bf16.msra.mxu3 %v1341_v4 }
  0x70   :  { %833 = vmatpush.bf16.msra.mxu1 %v1333_v7 }
  0x72   :  { %848 = vmatpush.bf16.msra.mxu3 %v1340_v6 }
  0x74   :  { %834 = vmatpush.bf16.msra.mxu1 %v1332_v9 }
  0x76   :  { %849 = vmatpush.bf16.msra.mxu3 %v1339_v8 }
  0x78   :  { %835 = vmatpush.bf16.msra.mxu1 %v1331_v11 }
  0x7a   :  { %850 = vmatpush.bf16.msra.mxu3 %v1338_v10 }
  0x7c   :  { %836 = vmatpush.bf16.msra.mxu1 %v1330_v12 }
  0xaa   :  { %v384_v27 = vpop.f32.mrf.mxu2 }
  0xb2   :  { %v386_v34 = vpop.f32.mrf.mxu2 }
  0xb7   :  { %v356_v30 = vpop.f32.mrf.mxu0 }
  0xb8   :  { %v370_v32 = vpop.f32.mrf.mxu1  ;;  %v357_v33 = vadd.f32 %v356_v30, %v151_v29 }
  0xba   :  { %v371_v35 = vadd.f32 %v370_v32, %v357_v33 }
  0xbc   :  { %v385_v40 = vadd.f32 %v384_v27, %v371_v35 }
  0xbe   :  { %v431_v44 = vmax.f32 %v385_v40, 0.0 }
  0xbf   :  { %v358_v36 = vpop.f32.mrf.mxu0 }
  0xc0   :  { %v398_v37 = vpop.f32.mrf.mxu3  ;;  %v359_v38 = vadd.f32 %v358_v36, %v151_v29  ;;  %v372_v39 = vpop.f32.mrf.mxu1 }
  0xc1   :  { %v399_v47 = vadd.f32 %v398_v37, %v152_v42  ;;  %v1359_v37 = vld [vmem:[%s1622_s6] ss:$0 sm:$0xff]  ;;  %s1532_s6 = smov [#allocation11]  }
  0xc2   :  { %v373_v41 = vadd.f32 %v372_v39, %v359_v38  ;;  %s907_s30 = sshll.u32 %s1532_s6, 4  ;;  %s908_s30 = int_to_ptr.vmem [resolvable:$true] %s907_s30 }
  0xc4   :  { %v387_v43 = vadd.f32 %v386_v34, %v373_v41 }
  0xc6   :  { %v433_v45 = vmax.f32 %v387_v43, 0.0 }
  0xc7   :  { %v426_v48 = vpop.f32.mrf.mxu0 }
  0xc8   :  { %v435_v49 = vpack.c.bf16 %v433_v45, %v431_v44  ;;  %v400_v50 = vpop.f32.mrf.mxu3 }
  0xc9   :  { %v401_v52 = vadd.f32 %v400_v50, %v152_v42 }
  0xca   :  { %v412_v46 = vpop.f32.mrf.mxu2  ;;  %643 = vmatmul.bf16.vlgmr.msrb.gmra.mxu1 %v435_v49  ;;  %671 = vmatmul.bf16.vlgmr.msra.gmra.mxu2 %v435_v49 }
  0xcb   :  { %v413_v51 = vadd.f32 %v412_v46, %v399_v47 }
  0xcd   :  { %v427_v55 = vadd.f32 %v426_v48, %v413_v51 }
  0xcf   :  { %v428_v57 = vpop.f32.mrf.mxu0  ;;  %v432_v59 = vmax.f32 %v427_v55, 0.0 }
  0xd2   :  { %v414_v54 = vpop.f32.mrf.mxu2 }
  0xd3   :  { %v415_v56 = vadd.f32 %v414_v54, %v401_v52 }
  0xd5   :  { %v429_v58 = vadd.f32 %v428_v57, %v415_v56 }
  0xd7   :  { %v434_v60 = vmax.f32 %v429_v58, 0.0 }
  0xd9   :  { %v436_v61 = vpack.c.bf16 %v434_v60, %v432_v59 }
  0xdb   :  { %657 = vmatmul.bf16.vlgmr.msrb.gmra.mxu3 %v436_v61  ;;  %685 = vmatmul.bf16.vlgmr.msra.gmra.mxu0 %v436_v61 }
 0x147   :  { %v644_v15 = vpop.f32.mrf.mxu1 }
 0x148   :  { %v645_v26 = vadd.f32 %v644_v15, %v471_v20 }
 0x14d   :  { %v672_v13 = vpop.f32.mrf.mxu2 }
 0x14e   :  { %v673_v18 = vadd.f32 %v672_v13, %v472_v53 }
 0x14f   :  { %v646_v25 = vpop.f32.mrf.mxu1 }
 0x150   :  { %v647_v29 = vadd.f32 %v646_v25, %v471_v20 }
 0x155   :  { %v674_v17 = vpop.f32.mrf.mxu2 }
 0x156   :  { %v675_v22 = vadd.f32 %v674_v17, %v472_v53 }
 0x158   :  { %v686_v16 = vpop.f32.mrf.mxu0 }
 0x159   :  { %v687_v21 = vadd.f32 %v686_v16, %v673_v18 }
 0x15b   :  { %v692_v27 = vmax.f32 %v687_v21, 0.0 }
 0x15e   :  { %v658_v19 = vpop.f32.mrf.mxu3 }
 0x15f   :  { %v659_v30 = vadd.f32 %v658_v19, %v645_v26 }
 0x160   :  { %v688_v23 = vpop.f32.mrf.mxu0 }
 0x161   :  { %v689_v24 = vadd.f32 %v688_v23, %v675_v22  ;;  %v691_v34 = vmax.f32 %v659_v30, 0.0 }
 0x163   :  { %v694_v28 = vmax.f32 %v689_v24, 0.0 }
 0x165   :  { %v696_v31 = vpack.c.bf16 %v694_v28, %v692_v27 }
 0x166   :  { %v660_v32 = vpop.f32.mrf.mxu3 }
 0x167   :  { %v661_v33 = vadd.f32 %v660_v32, %v647_v29  ;;  %851 = vmatmul.bf16.vlgmr.msra.gmra.mxu3 %v696_v31 }
 0x169   :  { %v693_v35 = vmax.f32 %v661_v33, 0.0 }
 0x16b   :  { %v695_v36 = vpack.c.bf16 %v693_v35, %v691_v34 }
 0x16d   :  { %837 = vmatmul.bf16.vlgmr.msra.gmra.mxu1 %v695_v36 }
 0x1ea   :  { %v838_v38 = vpop.f32.mrf.mxu1  ;;  %v852_v39 = vpop.f32.mrf.mxu3 }
 0x1eb   :  { %v839_v40 = vadd.f32 %v1359_v37, %v838_v38 }
 0x1ed   :  { %v853_v41 = vadd.f32 %v852_v39, %v839_v40 }
 0x1ef   :  { %857 = vmax.xlane.f32.xlu0 %v853_v41 }
 0x1f2   :  { %v840_v42 = vpop.f32.mrf.mxu1  ;;  %v854_v44 = vpop.f32.mrf.mxu3 }
 0x1f3   :  { %v841_v43 = vadd.f32 %v1359_v37, %v840_v42 }
 0x1f5   :  { %v855_v45 = vadd.f32 %v854_v44, %v841_v43 }
 0x1f7   :  { %859 = vmax.xlane.f32.xlu0 %v855_v45 }
 0x262   :  { %v858_v46 = vpop.xlane.xlu0 %857 }
 0x263   :  { %v861_v47 = vsub.f32 %v853_v41, %v858_v46 }
 0x265   :  { %v863_v48 = vmul.f32 1.442695, %v861_v47 }
 0x267   :  { %1360 = vpow2.f32 %v863_v48 }
 0x26a   :  { %v860_v49 = vpop.xlane.xlu0 %859 }
 0x26b   :  { %v862_v50 = vsub.f32 %v855_v45, %v860_v49 }
 0x26d   :  { %v1361_v51 = vpop.eup %1360  ;;  %v865_v52 = vmul.f32 1.442695, %v862_v50 }
 0x26e   :  { %867 = vadd.xlane.f32.xlu1 %v1361_v51 }
 0x26f   :  { %1362 = vpow2.f32 %v865_v52 }
 0x275   :  { %v1363_v54 = vpop.eup %1362 }
 0x276   :  { %869 = vadd.xlane.f32.xlu1 %v1363_v54 }
 0x2e1   :  { %v868_v55 = vpop.xlane.xlu1 %867 }
 0x2e2   :  { %1364 = vrcp.f32 %v868_v55  ;;  %v882_v60 = vand.u32 2147483648, %v868_v55  ;;  %v880_v62 = vand.u32 2147483647, %v868_v55  ;;  %vm876_vm4 = vweird.f32 %v868_v55 }
 0x2e4   :  { %v883_v0 = vor.u32 1.1754944e-38, %v882_v60  ;;  %vm881_vm6 = vcmp.eq.f32.partialorder %v880_v62, 8.507059e+37 }
 0x2e8   :  { %v1365_v56 = vpop.eup %1364 }
 0x2e9   :  { %v872_v57 = vmul.f32 %v1365_v56, %v868_v55  ;;  %v870_v58 = vpop.xlane.xlu1 %869  ;;  %vm877_vm3 = vweird.f32 %v1365_v56 }
 0x2ea   :  { %1366 = vrcp.f32 %v870_v58  ;;  %vm878_vm5 = vmor %vm876_vm4, %vm877_vm3  ;;  %v897_v7 = vand.u32 2147483648, %v870_v58  ;;  %v895_v9 = vand.u32 2147483647, %v870_v58  ;;  %vm891_vm8 = vweird.f32 %v870_v58 }
 0x2eb   :  { %v873_v59 = vsub.f32 1.0, %v872_v57 }
 0x2ec   :  { %v898_v11 = vor.u32 1.1754944e-38, %v897_v7  ;;  %vm896_vm10 = vcmp.eq.f32.partialorder %v895_v9, 8.507059e+37 }
 0x2ed   :  { %v874_v61 = vmul.f32 %v1365_v56, %v873_v59 }
 0x2ef   :  { %v875_v63 = vadd.f32 %v1365_v56, %v874_v61 }
 0x2f0   :  { %v1367_v2 = vpop.eup %1366 }
 0x2f1   :  { %v887_v1 = vmul.f32 %v1367_v2, %v870_v58  ;;  %v879_v3 = vsel %vm878_vm5, %v1365_v56, %v875_v63  ;;  %vm892_vm7 = vweird.f32 %v1367_v2 }
 0x2f2   :  { %v884_v4 = vsel %vm881_vm6, %v883_v0, %v879_v3  ;;  %vm893_vm9 = vmor %vm891_vm8, %vm892_vm7 }
 0x2f3   :  { %v888_v5 = vsub.f32 1.0, %v887_v1  ;;  %v885_v6 = vmul.f32 %v1361_v51, %v884_v4 }
 0x2f5   :  { %v889_v8 = vmul.f32 %v1367_v2, %v888_v5  ;;  %901 = vst [vmem:[#allocation11] sm:$0xff] %v885_v6 }
 0x2f7   :  { %v890_v10 = vadd.f32 %v1367_v2, %v889_v8 }
 0x2f9   :  { %v894_v12 = vsel %vm893_vm9, %v1367_v2, %v890_v10 }
 0x2fa   :  { %v899_v13 = vsel %vm896_vm10, %v898_v11, %v894_v12 }
 0x2fb   :  { %v900_v14 = vmul.f32 %v1363_v54, %v899_v13 }
 0x2fd   :  { %902 = vst [vmem:[#allocation11 + $0x8] sm:$0xff] %v900_v14 }
 0x2fe   :  { %915 = dma.vmem_to_hbm [thread:$0]  %s908_s30, 256, %s910_s12, [#allocation4], %s1521_s9, %s1521_s9, %s1522_s10  }
 0x2ff   :  { %1518 = dma.done.wait [#allocation4], 256  }
 0x300   :  { %1519 = vsyncadd [#allocation4], 4294967040 }
 0x301   :  { %920 = vsyncpa [#allocation3], 1 }
 0x302   :  { %921 = vsyncpa [#allocation6], 1 }
 0x303   :  { %922 = vsyncpa [#allocation9], 1 }
 0x304   :  { %923 = vsyncpa [#allocation4], 1 }

</bundles_post_ra>
